<compile_context>
chip_gen: v7x
topology: tpu7x:2x2x1
jax: 0.10.0
libtpu: 0.0.40
codegen_flags: <defaults>
</compile_context>

<pallas_src>
import jax
import jax.numpy as jnp
from jax.experimental import pallas as pl
from jax.experimental.pallas import tpu as pltpu


def conv1x1_sum_kernel(w_ref, x1_ref, x3_ref, o_ref):
    """out[b] = W @ (x1[b] + x3[b]) for every batch row in this block.

    w_ref  : VMEM (Cout, Cin) f32   -- tiny, equals full array dims
    x*_ref : VMEM (BN, Cin, THW) f32
    o_ref  : VMEM (BN, Cout, THW)
    """
    w = w_ref[...]                                   # (Cout, Cin)
    for b in range(x1_ref.shape[0]):                 # static unroll; BN is 1 or small N
        s = x1_ref[b] + x3_ref[b]                    # (Cin, THW): one full-vreg VPU add
        # Single MXU push/pop replaces 20 under-filled VPU FMAs + a concat.
        o_ref[b] = jnp.dot(w, s,
                           preferred_element_type=jnp.float32).astype(o_ref.dtype)


def _round_up(x, m):
    return (x + m - 1) // m * m


def _pick_hw_tile(hw, cin, cout, dtype_bytes=4, target_bytes=10 << 20):
    """Largest multiple-of-128 lane tile whose double-buffered working set
    (Cin/Cout padded to 8 physical sublanes) stays within ~target_bytes of
    scoped VMEM (safe on v5e's 16 MiB default; far under v6e/v7x limits)."""
    if hw <= 128:
        return hw                                    # full extent satisfies the (8,128) rule
    cin_p, cout_p = _round_up(cin, 8), _round_up(cout, 8)
    # 2 inputs + 1 output, each double-buffered by the BlockSpec pipeline.
    per_lane = (2 * 2 * cin_p + 2 * cout_p) * dtype_bytes
    cap = max(128, (target_bytes // per_lane) // 128 * 128)
    return min(cap, hw // 128 * 128)


def model_forward(x1, x3, weight, *, vmem_budget_bytes=10 << 20):
    """x1, x3: (N, Cin, H, W) f32; weight: (Cout, Cin, 1, 1) f32 -> (N, Cout, H, W)."""
    N, Cin, H, W = x1.shape
    Cout = weight.shape[0]
    HW = H * W

    # Free reshapes only (no transposes => no extra full-tensor HBM passes).
    x1r = x1.reshape(N, Cin, HW)
    x3r = x3.reshape(N, Cin, HW)
    w2d = weight.reshape(Cout, Cin)

    thw = _pick_hw_tile(HW, Cin, Cout, target_bytes=vmem_budget_bytes)
    grid_h = pl.cdiv(HW, thw)                        # ragged last tile handled by Pallas

    # Collapse the batch into a single grid step when the whole problem fits:
    # at tiny sizes the ~0.35 us per-step overhead dominates the DMA/compute.
    cin_p, cout_p = _round_up(Cin, 8), _round_up(Cout, 8)
    whole_bytes = N * (2 * cin_p + cout_p) * _round_up(HW, 128) * 4 * 2
    if grid_h == 1 and whole_bytes <= vmem_budget_bytes:
        block_n, grid_n = N, 1
    else:
        block_n, grid_n = 1, N

    out_flat = pl.pallas_call(
        conv1x1_sum_kernel,
        out_shape=jax.ShapeDtypeStruct((N, Cout, HW), x1.dtype),
        grid=(grid_n, grid_h),
        in_specs=[
            # Tiny (Cout, Cin) weight block in VMEM, same block for every step.
            pl.BlockSpec((Cout, Cin), lambda n, h: (0, 0)),
            pl.BlockSpec((block_n, Cin, thw), lambda n, h: (n, 0, h)),
            pl.BlockSpec((block_n, Cin, thw), lambda n, h: (n, 0, h)),
        ],
        out_specs=pl.BlockSpec((block_n, Cout, thw), lambda n, h: (n, 0, h)),
        compiler_params=pltpu.CompilerParams(
            # Both grid axes are fully independent -> megacore can split them
            # when there are multiple sizeable steps; irrelevant for grid (1,1).
            dimension_semantics=("parallel", "parallel")),
    )(w2d, x1r, x3r)

    return out_flat.reshape(N, Cout, H, W)


if __name__ == "__main__":
    key = jax.random.PRNGKey(0)
    k1, k2, k3 = jax.random.split(key, 3)

    N, Cin, Cout, H, W = 2, 5, 4, 16, 16
    x1 = jax.random.normal(k1, (N, Cin, H, W), dtype=jnp.float32)
    x3 = jax.random.normal(k2, (N, Cin, H, W), dtype=jnp.float32)
    # Deterministic synthetic Conv2d weight (Cout, Cin, 1, 1), no bias.
    weight = jax.random.normal(k3, (Cout, Cin, 1, 1), dtype=jnp.float32) * 0.1

    out = model_forward(x1, x3, weight)
    out = jax.block_until_ready(out)

    # Pure-JAX reference: conv(x1) + conv(x3) in NCHW.
    w2d = weight.reshape(Cout, Cin)
    ref = (jnp.einsum("nihw,oi->nohw", x1, w2d)
           + jnp.einsum("nihw,oi->nohw", x3, w2d))

    assert out.shape == (N, Cout, H, W)
    assert jnp.allclose(out, ref, atol=1e-5, rtol=1e-5)
    print("KERNEL_OK")
</pallas_src>

<mosaic_0001>
module attributes {stable_mosaic.version = 11 : i64} {
  func.func @conv1x1_sum_kernel(%arg0: i32, %arg1: i32, %arg2: memref<4x5xf32, #tpu.memory_space<vmem>>, %arg3: memref<2x5x256xf32, #tpu.memory_space<vmem>>, %arg4: memref<2x5x256xf32, #tpu.memory_space<vmem>>, %arg5: memref<2x4x256xf32, #tpu.memory_space<vmem>>) attributes {dimension_semantics = [#tpu.dimension_semantics<parallel>, #tpu.dimension_semantics<parallel>], iteration_bounds = array<i64: 1, 1>, scalar_prefetch = 0 : i64, scratch_operands = 0 : i64, tpu.core_type = #tpu.core_type<tc>, window_params = [{pipeline_mode = #tpu.pipeline_mode<synchronous>, transform_indices = @transform_0, window_bounds = array<i64: 4, 5>}, {transform_indices = @transform_1, window_bounds = array<i64: 2, 5, 256>}, {transform_indices = @transform_2, window_bounds = array<i64: 2, 5, 256>}, {transform_indices = @transform_3, window_bounds = array<i64: 2, 4, 256>}]} {
    %c0 = arith.constant 0 : index
    %c0_0 = arith.constant 0 : index
    %0 = vector.load %arg2[%c0, %c0_0] : memref<4x5xf32, #tpu.memory_space<vmem>>, vector<4x5xf32>
    %c0_1 = arith.constant 0 : index
    %c0_2 = arith.constant 0 : index
    %c0_3 = arith.constant 0 : index
    %1 = vector.load %arg3[%c0_1, %c0_2, %c0_3] : memref<2x5x256xf32, #tpu.memory_space<vmem>>, vector<1x5x256xf32>
    %2 = vector.shape_cast %1 : vector<1x5x256xf32> to vector<5x256xf32>
    %c0_4 = arith.constant 0 : index
    %c0_5 = arith.constant 0 : index
    %c0_6 = arith.constant 0 : index
    %3 = vector.load %arg4[%c0_4, %c0_5, %c0_6] : memref<2x5x256xf32, #tpu.memory_space<vmem>>, vector<1x5x256xf32>
    %4 = vector.shape_cast %3 : vector<1x5x256xf32> to vector<5x256xf32>
    %5 = arith.addf %2, %4 : vector<5x256xf32>
    %cst = arith.constant dense<0.000000e+00> : vector<4x256xf32>
    %6 = tpu.matmul %0, %5, %cst {dimension_numbers = #tpu.dot_dimension_numbers<[1], [0], [0], [1], [0, 0, 1, 1], [], []>} : vector<4x5xf32>, vector<5x256xf32>, vector<4x256xf32> -> vector<4x256xf32>
    %c0_7 = arith.constant 0 : index
    %c0_8 = arith.constant 0 : index
    %c0_9 = arith.constant 0 : index
    %7 = vector.load %arg5[%c0_7, %c0_8, %c0_9] : memref<2x4x256xf32, #tpu.memory_space<vmem>>, vector<1x4x256xf32>
    %8 = vector.shape_cast %7 : vector<1x4x256xf32> to vector<4x256xf32>
    %9 = vector.shape_cast %6 : vector<4x256xf32> to vector<1x4x256xf32>
    tpu.vector_store %arg5[%c0_7, %c0_8, %c0_9], %9 {strides = array<i32>} : memref<2x4x256xf32, #tpu.memory_space<vmem>>, vector<1x4x256xf32>,
    %c1 = arith.constant 1 : index
    %c0_10 = arith.constant 0 : index
    %c0_11 = arith.constant 0 : index
    %10 = vector.load %arg3[%c1, %c0_10, %c0_11] : memref<2x5x256xf32, #tpu.memory_space<vmem>>, vector<1x5x256xf32>
    %11 = vector.shape_cast %10 : vector<1x5x256xf32> to vector<5x256xf32>
    %c1_12 = arith.constant 1 : index
    %c0_13 = arith.constant 0 : index
    %c0_14 = arith.constant 0 : index
    %12 = vector.load %arg4[%c1_12, %c0_13, %c0_14] : memref<2x5x256xf32, #tpu.memory_space<vmem>>, vector<1x5x256xf32>
    %13 = vector.shape_cast %12 : vector<1x5x256xf32> to vector<5x256xf32>
    %14 = arith.addf %11, %13 : vector<5x256xf32>
    %cst_15 = arith.constant dense<0.000000e+00> : vector<4x256xf32>
    %15 = tpu.matmul %0, %14, %cst_15 {dimension_numbers = #tpu.dot_dimension_numbers<[1], [0], [0], [1], [0, 0, 1, 1], [], []>} : vector<4x5xf32>, vector<5x256xf32>, vector<4x256xf32> -> vector<4x256xf32>
    %c1_16 = arith.constant 1 : index
    %c0_17 = arith.constant 0 : index
    %c0_18 = arith.constant 0 : index
    %16 = vector.load %arg5[%c1_16, %c0_17, %c0_18] : memref<2x4x256xf32, #tpu.memory_space<vmem>>, vector<1x4x256xf32>
    %17 = vector.shape_cast %16 : vector<1x4x256xf32> to vector<4x256xf32>
    %18 = vector.shape_cast %15 : vector<4x256xf32> to vector<1x4x256xf32>
    tpu.vector_store %arg5[%c1_16, %c0_17, %c0_18], %18 {strides = array<i32>} : memref<2x4x256xf32, #tpu.memory_space<vmem>>, vector<1x4x256xf32>,
    return
  }
  func.func @transform_0(%arg0: i32, %arg1: i32) -> (i32, i32) {
    %c0_i32 = arith.constant 0 : i32
    %c0_i32_0 = arith.constant 0 : i32
    %c0_i32_1 = arith.constant 0 : i32
    return %c0_i32, %c0_i32_0 : i32, i32
  }
  func.func @transform_1(%arg0: i32, %arg1: i32) -> (i32, i32, i32) {
    %c0_i32 = arith.constant 0 : i32
    %c0_i32_0 = arith.constant 0 : i32
    return %arg0, %c0_i32, %arg1 : i32, i32, i32
  }
  func.func @transform_2(%arg0: i32, %arg1: i32) -> (i32, i32, i32) {
    %c0_i32 = arith.constant 0 : i32
    %c0_i32_0 = arith.constant 0 : i32
    return %arg0, %c0_i32, %arg1 : i32, i32, i32
  }
  func.func @transform_3(%arg0: i32, %arg1: i32) -> (i32, i32, i32) {
    %c0_i32 = arith.constant 0 : i32
    %c0_i32_0 = arith.constant 0 : i32
    return %arg0, %c0_i32, %arg1 : i32, i32, i32
  }
}

</mosaic_0001>

<bundles_post_ra>
// kernel: tpu_custom_call.1
= control target key start
LH: loop header
LB: loop body
LE: loop exit
PB: predicated region body
PF: predicated region fallthrough
CT: control target
= control target key end

     0   :  { %vm26_vm0 = vcmask 1044480   ;;  %v254_v6 = vmov 0.0   ;;  %vm22_vm1 = vcmask 39936   ;;  %s321_s0 = inlined_call_operand.vmem [shape: f32[4,5], index: 0, kind: input, shape index: {}]   ;;  %s322_s1 = inlined_call_operand.vmem [shape: f32[2,5,256], index: 1, kind: input, shape index: {}]   ;;  %s323_s2 = inlined_call_operand.vmem [shape: f32[2,5,256], index: 2, kind: input, shape index: {}]   ;;  %s324_s3 = inlined_call_operand.hbm [shape: f32[2,4,256], index: 3, kind: output, shape index: {}]  }
   0x1   :  { %v17_v0 = vld [vmem:[%s322_s1 + $0x8] sm:$0x1f]  ;;  %v220_v3 = vld [vmem:[%s322_s1 + $0x18] sm:$0x1f]  ;;  %v16_v5 = vld [vmem:[%s322_s1] sm:$0x1f]  ;;  %97 = vmatprep.mubr.f32.mxu0 %v254_v6  ;;  %187 = vmatprep.mubr.f32.mxu1 %v254_v6 }
   0x2   :  { %v19_v1 = vld [vmem:[%s323_s2 + $0x8] sm:$0x1f]  ;;  %v222_v4 = vld [vmem:[%s323_s2 + $0x18] sm:$0x1f]  ;;  %v18_v8 = vld [vmem:[%s323_s2] sm:$0x1f] }
   0x3   :  { %v21_v2 = vadd.f32 %v19_v1, %v17_v0  ;;  %v116_v7 = vadd.f32 %v222_v4, %v220_v3  ;;  %v219_v9 = vld [vmem:[%s322_s1 + $0x10] sm:$0x1f]  ;;  %v20_v11 = vadd.f32 %v18_v8, %v16_v5  ;;  %v15_v13 = vld [vmem:[%s321_s0] sm:$0xf] }
   0x4   :  { %v221_v10 = vld [vmem:[%s323_s2 + $0x10] sm:$0x1f] }
   0x5   :  { %216 = vmatprep.subr.msk.mxu0 %vm26_vm0, %v21_v2  ;;  %v115_v12 = vadd.f32 %v221_v10, %v219_v9 }
   0x6   :  { %8 = vsyncpa [#allocation3], 0  ;;  %223 = vmatprep.subr.msk.mxu1 %vm26_vm0, %v116_v7  ;;  %217 = vmatpush1.msk.msra.mxu0 %vm26_vm0, %v20_v11  ;;  %s255_s1 = smov [#allocation2]  }
   0x7   :  { %224 = vmatpush1.msk.msra.mxu1 %vm26_vm0, %v115_v12  ;;  %218 = vmatmul.mubr.msk.f32.vlgmr.msra.gmra.mrb[0].mxu0 %vm22_vm1, %v15_v13  ;;  %s205_s2 = sshll.u32 %s255_s1, 4  ;;  %s206_s2 = int_to_ptr.vmem [resolvable:$true] %s205_s2 }
   0x8   :  { %225 = vmatmul.mubr.msk.f32.vlgmr.msra.gmra.mrb[0].mxu1 %vm22_vm1, %v15_v13  ;;  %s230_s0 = scalar_lea.vmem %s206_s2, 256  ;;  %p235_p1 = scmp.lt.s32.totalorder %s206_s2, %s206_s2 }
   0x9   :  { %p231_p0 = scmp.ne.s32.totalorder %s206_s2, %s230_s0  ;;  %p236_p2 = scmp.lt.s32.totalorder %s230_s0, %s230_s0 }
   0xb   :  { %p237_p3 = por %p236_p2, %p235_p1 }
   0xd   :  { %p238_p4 = pnand %p237_p3, %p231_p0 }
  0xda   :  { %v99_v14 = vpop.f32.mrb[0].mxu0 }
  0xdb   :  { %v189_v15 = vpop.f32.mrb[0].mxu1  ;;  %v101_v16 = vpop.f32.mrb[1].mxu0 }
  0xdc   :  { %v191_v17 = vpop.f32.mrb[1].mxu1  ;;  %v106_v18 = vcombine.low %v99_v14, %v101_v16 }
  0xdd   :  { %v196_v19 = vcombine.low %v189_v15, %v191_v17 }
  0xde   :  { %108 = vst [vmem:[#allocation2] sm:$0xff] %v106_v18 }
  0xdf   :  { %199 = vst [vmem:[#allocation2 + $0x8] sm:$0xff] %v196_v19 }
  0xe0   :  { %241 = shalt.err (!%p238_p4)
}
  0xe1   :  { %s242_s5 = scalar_lea.hbm %s324_s3, 256 }
  0xe2   :  { %p243_p5 = scmp.ne.s32.totalorder %s324_s3, %s242_s5  ;;  %p246_p6 = scmp.lt.u32.totalorder %s242_s5, %s324_s3 }
  0xe4   :  { %p248_p7 = pnand %p246_p6, %p243_p5 }
  0xe6   :  { %251 = shalt.err (!%p248_p7)
}
  0xe7   :  { %s256_s10 = smov 128   ;;  %s257_s11 = smov 8  }
  0xe8   :  { %211 = dma.vmem_to_hbm [thread:$0]  %s206_s2, 256, %s324_s3, [#allocation3], %s256_s10, %s256_s10, %s257_s11  }
  0xe9   :  { %252 = dma.done.wait [#allocation3], 256  }
  0xea   :  { %253 = vsyncadd [#allocation3], 4294967040 }
  0xeb   :  { %215 = vsyncpa [#allocation3], 1 }

</bundles_post_ra>
